<compile_context>
chip_gen: v6e
topology: v6e:2x2x1
jax: 0.10.0
libtpu: 0.0.40
codegen_flags: <defaults>
</compile_context>

<pallas_src>
import functools

import jax
import jax.numpy as jnp
from jax import lax
from jax.experimental import pallas as pl
from jax.experimental.pallas import tpu as pltpu


def _apply_rope(x, sin, cos, o_ref, *, dim, use_roll):
    """x: (H, ts, Dblk); sin/cos: (1, ts, dim) f32 (sin is PRE-SIGNED)."""
    half = dim // 2
    d_blk = x.shape[-1]
    rot = x if d_blk == dim else x[..., :dim]
    rot_f = rot.astype(jnp.float32)

    if use_roll:
        # roll(rot, half) == concat(x2, x1); rotate_half's sign lives in the
        # pre-signed sin table, so the rotate is a single XLU op.
        rolled = pltpu.roll(rot_f, shift=half, axis=rot_f.ndim - 1)
    else:
        # Fallback for rotary dims that are not lane-aligned.
        # TODO(synk): for dim % 128 != 0 (e.g. dim=64), re-layout in the
        # wrapper so H*D forms the lane axis and stores stay lane-dense.
        rolled = jnp.concatenate([rot_f[..., half:], rot_f[..., :half]], axis=-1)

    out_rot = (rot_f * cos + rolled * sin).astype(o_ref.dtype)

    if d_blk == dim:
        o_ref[0] = out_rot
    else:
        # Single full-width (lane-dense) store instead of two partial stores.
        tail = x[..., dim:].astype(o_ref.dtype)
        o_ref[0] = jnp.concatenate([out_rot, tail], axis=-1)


def _rope_kernel(x_ref, sin_ref, cos_ref, o_ref, *, dim, use_roll):
    # x_ref  : (1, H, ts, Dblk)   Dblk == dim (rot-only aliased path) or == D
    # sin_ref: (1, ts, dim) f32   PRE-SIGNED sin table (concat(-sin_lo, sin_hi))
    # cos_ref: (1, ts, dim) f32
    _apply_rope(x_ref[0], sin_ref[...], cos_ref[...], o_ref,
                dim=dim, use_roll=use_roll)


def _rope_gather_kernel(x_ref, pid_ref, sin_tab_ref, cos_tab_ref, o_ref, *,
                        dim, use_roll):
    # x_ref      : (1, H, ts, Dblk)
    # pid_ref    : (1, ts, 1) int32  positions for this (seq-tile, batch)
    # sin_tab_ref: (P, dim) f32      pre-signed sin table, resident in VMEM
    # cos_tab_ref: (P, dim) f32
    ids = pid_ref[0]                               # (ts, 1) int32
    ts = ids.shape[0]
    P = sin_tab_ref.shape[0]
    # One-hot gather on the MXU: exact for 0/1 one-hots, and the kernel is
    # HBM-bound so the matmul is free compute.
    onehot = (lax.broadcasted_iota(jnp.int32, (ts, P), 1) == ids).astype(jnp.float32)
    sin = jnp.dot(onehot, sin_tab_ref[...], preferred_element_type=jnp.float32)
    cos = jnp.dot(onehot, cos_tab_ref[...], preferred_element_type=jnp.float32)
    _apply_rope(x_ref[0], sin[None], cos[None], o_ref,
                dim=dim, use_roll=use_roll)


class RotaryEmbeddingPallas:
    # Max table bytes (sin + cos, f32) we keep resident in VMEM for the fused
    # position_ids gather path.
    _FUSED_TABLE_BYTES = 2 << 20

    def __init__(self, total_dim, frac, max_position_embeddings, base,
                 position_scale=1):
        assert total_dim % frac == 0
        self.total_dim = total_dim
        self.dim = total_dim // frac
        assert self.dim % 2 == 0
        self.max_position_embeddings = max_position_embeddings
        self.base = float(base)
        self.position_scale = position_scale

        # Deterministic "buffer" construction (mirrors the PyTorch __init__),
        # kept in f32 like the PyTorch buffers.
        freq_ar = jnp.arange(0, self.dim, 2, dtype=jnp.float32)
        inv_freq = 1.0 / (self.base ** (freq_ar / self.dim))           # (dim/2,)
        pos = jnp.arange(0, self.max_position_embeddings,
                         dtype=jnp.float32) * self.position_scale       # (P,)
        freqs = (inv_freq[:, None] * pos[None, :]).T                    # (P, dim/2)
        freqs = jnp.concatenate((freqs, freqs), axis=-1)                # (P, dim)
        self.sin_emb = jnp.sin(freqs)      # matches the PyTorch buffer exactly
        self.cos_emb = jnp.cos(freqs)
        # Pre-signed sin table: fold rotate_half's [-x2, x1] sign here (free at
        # trace time) so the kernel only needs a roll + two multiplies.
        half = self.dim // 2
        self.sin_signed = jnp.concatenate(
            (-self.sin_emb[:, :half], self.sin_emb[:, half:]), axis=-1)

    def __call__(self, x, position_ids=None):
        B, H, S, D = x.shape
        assert D == self.total_dim
        dim = self.dim
        P = self.max_position_embeddings
        itemsize = jnp.dtype(x.dtype).itemsize

        # Rot-only aliased path: only the first `dim` columns are read/written;
        # the pass-through tail [dim, D) lives in the aliased output buffer.
        # NOTE: the caller should donate x (jax.jit donate_argnums=...) when
        # this path is taken, otherwise XLA inserts a defensive copy of x.
        # TODO(synk): profile the strided 256 B bursts on v7x; if effective BW
        # drops, pack pairs via pltpu.bitcast or fall back to full-D blocks.
        rot_only = (dim < D) and (dim % 128 == 0)
        d_blk = dim if rot_only else D
        use_roll = (dim % 128 == 0)

        # ---- sequence tiling: ~4 MiB of x per block, sublane-packed, and a
        # ---- tile that divides S when possible (no ragged masked-store tail).
        sub = max(8, 32 // itemsize)               # 8 f32 / 16 bf16 / 32 int8
        row_bytes = max(1, H * d_blk * itemsize)
        ts_cap = max(1, (4 << 20) // row_bytes)
        if ts_cap >= S:
            ts = S
        else:
            ts_cap = max(sub, (ts_cap // sub) * sub)
            ts = next((c for c in range(ts_cap, sub - 1, -sub) if S % c == 0),
                      ts_cap)
        n_s = pl.cdiv(S, ts)
        # TODO(synk): for tiny S (decode), fold H into the sublane axis
        # ((B, H*S, D) view) to restore vreg occupancy and cut grid steps.

        # Grid: seq-tile OUTER, batch INNER -> shared sin/cos block index is
        # constant across the inner batch loop (no re-DMA), and the leading
        # parallel axis shards across v7x's two TensorCores.
        x_spec = pl.BlockSpec((1, H, ts, d_blk), lambda s, b: (b, 0, s, 0))
        out_spec = pl.BlockSpec((1, H, ts, d_blk), lambda s, b: (b, 0, s, 0))

        x_block_bytes = H * ts * d_blk * itemsize
        flops = 3 * B * H * S * dim
        kernel = functools.partial(_rope_kernel, dim=dim, use_roll=use_roll)

        fused_gather = (
            position_ids is not None
            and use_roll
            and 2 * P * dim * 4 <= self._FUSED_TABLE_BYTES
        )

        if position_ids is None:
            assert S <= P
            sin = self.sin_signed[:S][None]                    # (1, S, dim) f32
            cos = self.cos_emb[:S][None]
            sc_spec = pl.BlockSpec((1, ts, dim), lambda s, b: (0, s, 0))
            operands = (x, sin, cos)
            in_specs = [x_spec, sc_spec, sc_spec]
            bytes_accessed = 2 * B * H * S * d_blk * itemsize + 2 * S * dim * 4
            vmem = 4 * x_block_bytes + 4 * ts * dim * 4
        elif fused_gather:
            assert position_ids.shape == (B, S)
            pids = position_ids.astype(jnp.int32).reshape(B, S, 1)
            pid_spec = pl.BlockSpec((1, ts, 1), lambda s, b: (b, s, 0))
            tab_spec = pl.BlockSpec((P, dim), lambda s, b: (0, 0))
            operands = (x, pids, self.sin_signed, self.cos_emb)
            in_specs = [x_spec, pid_spec, tab_spec, tab_spec]
            kernel = functools.partial(_rope_gather_kernel, dim=dim,
                                       use_roll=use_roll)
            bytes_accessed = (2 * B * H * S * d_blk * itemsize
                              + 2 * P * dim * 4 + B * S * 4)
            flops += 4 * B * n_s * ts * P * dim      # two one-hot MXU gathers
            vmem = (4 * x_block_bytes + 2 * P * dim * 4
                    + ts * P * 4 + 4 * ts * 4)
        else:
            # Large table: materialize (B, S, dim) sin/cos with an XLA gather.
            # TODO(synk): fuse big-table gathers too (manual DMA row gather).
            assert position_ids.shape == (B, S)
            sin = jnp.take(self.sin_signed, position_ids, axis=0)  # (B,S,dim)
            cos = jnp.take(self.cos_emb, position_ids, axis=0)
            sc_spec = pl.BlockSpec((1, ts, dim), lambda s, b: (b, s, 0))
            operands = (x, sin, cos)
            in_specs = [x_spec, sc_spec, sc_spec]
            bytes_accessed = (2 * B * H * S * d_blk * itemsize
                              + 2 * B * S * dim * 4)
            vmem = 4 * x_block_bytes + 4 * ts * dim * 4

        # Double-buffered footprint + headroom; clamped to stay inside v7x's
        # 64 MiB/TC while still exceeding the small default scoped limit.
        vmem_limit = int(min(max(vmem + (8 << 20), 16 << 20), 48 << 20))

        return pl.pallas_call(
            kernel,
            out_shape=jax.ShapeDtypeStruct((B, H, S, D), x.dtype),
            grid=(n_s, B),
            in_specs=list(in_specs),
            out_specs=out_spec,
            input_output_aliases={0: 0} if rot_only else {},
            compiler_params=pltpu.CompilerParams(
                dimension_semantics=("parallel", "parallel"),
                vmem_limit_bytes=vmem_limit),
            cost_estimate=pl.CostEstimate(
                flops=int(flops), transcendentals=0,
                bytes_accessed=int(bytes_accessed)),
        )(*operands)


def _reference(rope, x, position_ids=None):
    """Pure-JAX mirror of the PyTorch forward, for verification."""
    S = x.shape[2]
    if position_ids is None:
        sin = rope.sin_emb[:S][None]
        cos = rope.cos_emb[:S][None]
    else:
        sin = jnp.take(rope.sin_emb, position_ids, axis=0)
        cos = jnp.take(rope.cos_emb, position_ids, axis=0)
    sin = sin[:, None]   # unsqueeze(1) -> broadcast over heads
    cos = cos[:, None]

    def rotate_half(v):
        h = v.shape[-1] // 2
        return jnp.concatenate((-v[..., h:], v[..., :h]), axis=-1)

    if rope.dim == rope.total_dim:
        return x * cos + rotate_half(x) * sin
    rot, no_rot = x[..., :rope.dim], x[..., rope.dim:]
    rot = rot * cos + rotate_half(rot) * sin
    return jnp.concatenate((rot, no_rot), axis=-1)


if __name__ == "__main__":
    key = jax.random.PRNGKey(0)
    k1, k2, k3 = jax.random.split(key, 3)
    B, H, S = 2, 4, 8

    # Config 1: lane-dense rotary dim: total_dim=256, frac=2 -> dim=128.
    # Exercises the aliased rot-only path (+ donation) and pltpu.roll.
    rope = RotaryEmbeddingPallas(total_dim=256, frac=2,
                                 max_position_embeddings=64, base=10000,
                                 position_scale=1)
    x = jax.random.normal(k1, (B, H, S, 256), dtype=jnp.float32)

    ref_none = _reference(rope, x, None)
    # Donate x so the rot-only input/output aliasing is honored (no defensive
    # copy). Use a private copy so x survives for the later tests.
    donated_call = jax.jit(rope.__call__, donate_argnums=(0,))
    out_none = jax.block_until_ready(donated_call(x + 0.0, None))
    assert jnp.allclose(out_none, ref_none, atol=1e-5, rtol=1e-5)
    # Pass-through tail must equal the donated input exactly.
    assert jnp.array_equal(out_none[..., rope.dim:], x[..., rope.dim:])

    # position_ids path: small table -> fused in-kernel one-hot gather.
    position_ids = jax.random.randint(k2, (B, S), 0, 64, dtype=jnp.int32)
    out_pid = jax.block_until_ready(rope(x, position_ids))
    ref_pid = _reference(rope, x, position_ids)
    assert jnp.allclose(out_pid, ref_pid, atol=1e-5, rtol=1e-5)

    # bf16 activations on the same config (f32 math, single cast at the store).
    xb = x.astype(jnp.bfloat16)
    out_bf16 = jax.block_until_ready(rope(xb, None))
    ref_bf16 = _reference(rope, xb, None)
    assert jnp.allclose(out_bf16.astype(jnp.float32),
                        ref_bf16.astype(jnp.float32), atol=2e-2, rtol=2e-2)

    # Config 2: frac=1 (full rotation), dim=128.
    rope1 = RotaryEmbeddingPallas(total_dim=128, frac=1,
                                  max_position_embeddings=64, base=10000,
                                  position_scale=1)
    x1 = jax.random.normal(k3, (B, H, S, 128), dtype=jnp.float32)
    out1 = jax.block_until_ready(rope1(x1, None))
    ref1 = _reference(rope1, x1, None)
    assert jnp.allclose(out1, ref1, atol=1e-5, rtol=1e-5)

    # Config 2b: big table -> non-fused position_ids fallback path.
    rope1b = RotaryEmbeddingPallas(total_dim=128, frac=1,
                                   max_position_embeddings=4096, base=10000,
                                   position_scale=1)
    pid_big = jax.random.randint(k2, (B, S), 0, 4096, dtype=jnp.int32)
    out1b = jax.block_until_ready(rope1b(x1, pid_big))
    ref1b = _reference(rope1b, x1, pid_big)
    assert jnp.allclose(out1b, ref1b, atol=1e-5, rtol=1e-5)

    # Config 3: toy non-lane-aligned rotary dim (fallback path): total_dim=32, frac=2.
    rope2 = RotaryEmbeddingPallas(total_dim=32, frac=2,
                                  max_position_embeddings=64, base=10000,
                                  position_scale=1)
    x2 = jax.random.normal(k1, (B, H, S, 32), dtype=jnp.float32)
    out2 = jax.block_until_ready(rope2(x2, None))
    ref2 = _reference(rope2, x2, None)
    assert jnp.allclose(out2, ref2, atol=1e-5, rtol=1e-5)

    print("KERNEL_OK")
</pallas_src>

<mosaic_0001>
module attributes {stable_mosaic.version = 11 : i64} {
  func.func @_rope_kernel(%arg0: i32, %arg1: i32, %arg2: memref<1x4x8x128xf32, #tpu.memory_space<vmem>>, %arg3: memref<1x8x128xf32, #tpu.memory_space<vmem>>, %arg4: memref<1x8x128xf32, #tpu.memory_space<vmem>>, %arg5: memref<1x4x8x128xf32, #tpu.memory_space<vmem>>) attributes {dimension_semantics = [#tpu.dimension_semantics<parallel>, #tpu.dimension_semantics<parallel>], iteration_bounds = array<i64: 1, 2>, scalar_prefetch = 0 : i64, scratch_operands = 0 : i64, tpu.core_type = #tpu.core_type<tc>, window_params = [{transform_indices = @transform_0, window_bounds = array<i64: 1, 4, 8, 128>}, {transform_indices = @transform_1, window_bounds = array<i64: 1, 8, 128>}, {transform_indices = @transform_2, window_bounds = array<i64: 1, 8, 128>}, {transform_indices = @transform_3, window_bounds = array<i64: 1, 4, 8, 128>}]} {
    %c0 = arith.constant 0 : index
    %c0_0 = arith.constant 0 : index
    %c0_1 = arith.constant 0 : index
    %c0_2 = arith.constant 0 : index
    %0 = vector.load %arg2[%c0, %c0_0, %c0_1, %c0_2] : memref<1x4x8x128xf32, #tpu.memory_space<vmem>>, vector<1x4x8x128xf32>
    %1 = vector.shape_cast %0 : vector<1x4x8x128xf32> to vector<4x8x128xf32>
    %c0_3 = arith.constant 0 : index
    %c0_4 = arith.constant 0 : index
    %c0_5 = arith.constant 0 : index
    %2 = vector.load %arg3[%c0_3, %c0_4, %c0_5] : memref<1x8x128xf32, #tpu.memory_space<vmem>>, vector<1x8x128xf32>
    %c0_6 = arith.constant 0 : index
    %c0_7 = arith.constant 0 : index
    %c0_8 = arith.constant 0 : index
    %3 = vector.load %arg4[%c0_6, %c0_7, %c0_8] : memref<1x8x128xf32, #tpu.memory_space<vmem>>, vector<1x8x128xf32>
    %c64_i32 = arith.constant 64 : i32
    %4 = tpu.dynamic_rotate %1 by %c64_i32 dim 2 : vector<4x8x128xf32>, i32 -> vector<4x8x128xf32>
    %5 = vector.broadcast %3 : vector<1x8x128xf32> to vector<4x8x128xf32>
    %6 = arith.mulf %1, %5 : vector<4x8x128xf32>
    %7 = vector.broadcast %2 : vector<1x8x128xf32> to vector<4x8x128xf32>
    %8 = arith.mulf %4, %7 : vector<4x8x128xf32>
    %9 = arith.addf %6, %8 : vector<4x8x128xf32>
    %c0_9 = arith.constant 0 : index
    %c0_10 = arith.constant 0 : index
    %c0_11 = arith.constant 0 : index
    %c0_12 = arith.constant 0 : index
    %10 = vector.load %arg5[%c0_9, %c0_10, %c0_11, %c0_12] : memref<1x4x8x128xf32, #tpu.memory_space<vmem>>, vector<1x4x8x128xf32>
    %11 = vector.shape_cast %10 : vector<1x4x8x128xf32> to vector<4x8x128xf32>
    %12 = vector.shape_cast %9 : vector<4x8x128xf32> to vector<1x4x8x128xf32>
    tpu.vector_store %arg5[%c0_9, %c0_10, %c0_11, %c0_12], %12 {strides = array<i32>} : memref<1x4x8x128xf32, #tpu.memory_space<vmem>>, vector<1x4x8x128xf32>,
    return
  }
  func.func @transform_0(%arg0: i32, %arg1: i32) -> (i32, i32, i32, i32) {
    %c0_i32 = arith.constant 0 : i32
    %c0_i32_0 = arith.constant 0 : i32
    %c0_i32_1 = arith.constant 0 : i32
    return %arg1, %c0_i32, %arg0, %c0_i32_0 : i32, i32, i32, i32
  }
  func.func @transform_1(%arg0: i32, %arg1: i32) -> (i32, i32, i32) {
    %c0_i32 = arith.constant 0 : i32
    %c0_i32_0 = arith.constant 0 : i32
    %c0_i32_1 = arith.constant 0 : i32
    return %c0_i32, %arg0, %c0_i32_0 : i32, i32, i32
  }
  func.func @transform_2(%arg0: i32, %arg1: i32) -> (i32, i32, i32) {
    %c0_i32 = arith.constant 0 : i32
    %c0_i32_0 = arith.constant 0 : i32
    %c0_i32_1 = arith.constant 0 : i32
    return %c0_i32, %arg0, %c0_i32_0 : i32, i32, i32
  }
  func.func @transform_3(%arg0: i32, %arg1: i32) -> (i32, i32, i32, i32) {
    %c0_i32 = arith.constant 0 : i32
    %c0_i32_0 = arith.constant 0 : i32
    %c0_i32_1 = arith.constant 0 : i32
    return %arg1, %c0_i32, %arg0, %c0_i32_0 : i32, i32, i32, i32
  }
}

</mosaic_0001>

<bundles_post_ra>
// kernel: a_call__.1
= control target key start
LH: loop header
LB: loop body
LE: loop exit
PB: predicated region body
PF: predicated region fallthrough
CT: control target
= control target key end

     0   :  { %8 = vsyncpa [#allocation3], 0  ;;  %s901_s0 = inlined_call_operand.hbm [shape: f32[2,4,8,256], index: 0, kind: input, shape index: {}, may-alias: {0,3}]   ;;  %s902_s1 = inlined_call_operand.hbm [shape: f32[1,8,128], index: 1, kind: input, shape index: {}]   ;;  %s903_s2 = inlined_call_operand.hbm [shape: f32[1,8,128], index: 2, kind: input, shape index: {}]   ;;  %s904_s3 = inlined_call_operand.hbm [shape: f32[2,4,8,256], index: 3, kind: output, shape index: {}, may-alias: {0,3}]  }
   0x1   :  { %10 = vsyncpa [#allocation3 + $0x1], 0 }
   0x2   :  { %11 = vsyncpa [#allocation6], 0 }
   0x3   :  { %12 = vsyncpa [#allocation4], 0 }
   0x4   :  { %14 = vsyncpa [#allocation4 + $0x1], 0  ;;  %s710_s12 = smov 0   ;;  %s712_s13 = smov 0  }
   0x5   :  { %s714_s14 = smov 0   ;;  %s716_s15 = smov 0  }
   0x6   :  { %s718_s16 = smov 0   ;;  %s720_s17 = smov 0  }
   0x7 LB: > { %s402_s18 = sadd.s32 4294967295, %s677_s17   ;;  %s403_s19 = sadd.s32 4294967294, %s677_s17   ;;  %s677_s17 = sphi %s720_s17, %s20_s17   ;;  %s673_s16 = sphi %s718_s16, %s930_s16   ;;  %s669_s15 = sphi %s716_s15, %s929_s15   ;;  %s665_s14 = sphi %s714_s14, %s928_s14   ;;  %s661_s13 = sphi %s712_s13, %s927_s13   ;;  %s657_s12 = sphi %s710_s12, %s926_s12  }
   0x8   : > { %s41_s20 = sadd.s32 1, %s665_s14  ;;  %p48_p0 = scmp.ne.s32.totalorder %s665_s14, %s661_s13 }
   0x9   : > { %p49_p1 = scmp.eq.s32.totalorder %s677_s17, 0  ;;  %p54_p2 = scmp.ne.s32.totalorder %s661_s13, %s657_s12 }
   0xa   : > { %p748_p3 = scmp.eq.s32.totalorder %s402_s18, 0  ;;  %p132_p4 = scmp.eq.s32.totalorder %s402_s18, 1 }
   0xb   : > { %p752_p5 = por %p49_p1, %p48_p0  ;;  %p138_p6 = scmp.eq.s32.totalorder %s403_s19, 1 }
   0xc   : > { %s911_s21 = scalar_select %p748_p3, 1, 0 }
   0xd   : > { %p758_p7 = por %p748_p3, %p54_p2  ;;  %p762_p8 = por %p132_p4, %p48_p0 }
   0xe   : > { %p766_p9 = por %p138_p6, %p54_p2  ;;  %p404_p10 = scmp.ge.s32.totalorder %s677_s17, 1 }
   0xf   : > { %s913_s23 = scalar_select %p758_p7, 1, 0 }
  0x10   : > { %s914_s24 = scalar_select %p762_p8, 1, 0 }
  0x11   : > { %s915_s25 = scalar_select %p766_p9, 1, 0 }
  0x12   : > { %p145_p11 = scmp.lt.s32.totalorder %s677_s17, 3  ;;  %s679_s27 = smov [#allocation5]  }
  0x13   : > { %s160_s28 = sshll.u32 %s679_s27, 4  ;;  %p452_p1 = scmp.lt.s32.totalorder %s677_s17, 2  ;;  %s161_s28 = int_to_ptr.vmem [resolvable:$true] %s160_s28 }
  0x14   : > { %p773_p13 = pnand %p404_p10, %p145_p11  ;;  %s680_s30 = smov [#allocation7]  }
  0x15   : > { %p782_p4 = pnand %p452_p1, %p752_p5  ;;  %s173_s4 = sshll.u32 %s680_s30, 4  ;;  %s174_s4 = int_to_ptr.vmem [resolvable:$true] %s173_s4 }
  0x16   : > { %s916_s26 = scalar_select %p773_p13, 1, 0 }
  0x17   : > { %p435_p0 = pneg %p773_p13  ;;  %s524_s6 = scalar_lea.vmem %s161_s28, 128 }
  0x18   : > { %s917_s29 = scalar_select %p782_p4, 1, 0 }
  0x19   : > { %p788_p2 = pnand %p435_p0, %p748_p3  ;;  %p525_p10 = scmp.ne.s32.totalorder %s161_s28, %s524_s6 }
  0x1a   : > { %p532_p1 = scmp.lt.s32.totalorder %s161_s28, %s161_s28  ;;  %p533_p12 = scmp.lt.s32.totalorder %s524_s6, %s524_s6 }
  0x1b   : > { %p515_p6 = pneg %p788_p2 }
  0x1c   : > { %p534_p9 = por %p533_p12, %p532_p1 }
  0x1d   : > { %p527_p5 = pnand %p525_p10, %p515_p6 }
  0x1f   : > { %p528_p11 = pneg %p527_p5 }
  0x21   : > { %p535_p8 = pnand %p534_p9, %p528_p11 }
  0x23   : > { %538 = shalt.err (!%p535_p8)
}
  0x24   : > { %438 = dma.hbm_to_vmem [thread:$0]  (!%p788_p2), %s902_s1, 128, %s161_s28, [#allocation6]  }
  0x25   : > { %s550_s9 = scalar_lea.vmem %s174_s4, 128  ;;  %p558_p10 = scmp.lt.s32.totalorder %s174_s4, %s174_s4 }
  0x26   : > { %p551_p0 = scmp.ne.s32.totalorder %s174_s4, %s550_s9  ;;  %p559_p5 = scmp.lt.s32.totalorder %s550_s9, %s550_s9 }
  0x28   : > { %p553_p3 = pnand %p551_p0, %p515_p6  ;;  %p560_p13 = por %p559_p5, %p558_p10 }
  0x2a   : > { %p554_p7 = pneg %p553_p3 }
  0x2c   : > { %p561_p4 = pnand %p560_p13, %p554_p7 }
  0x2e   : > { %564 = shalt.err (!%p561_p4)
}
  0x2f   : > { %441 = dma.hbm_to_vmem [thread:$0]  (!%p788_p2), %s903_s2, 128, %s174_s4, [#allocation6]  }
  0x30   : > { %s29_s18 = sadd.s32 1, %s673_s16  ;;  %s184_s19 = sand.u32 1, %s665_s14  }
  0x31   : > { %p30_p3 = scmp.ge.s32.totalorder %s29_s18, 2  ;;  %s408_s22 = sshll.u32 %s184_s19, 5 }
  0x32   : > { %s421_s27 = sshll.u32 %s673_s16, 10  ;;  %s188_s7 = scalar_lea.vmem [#allocation2], %s408_s22 }
  0x33   : > { %s932_s18 = smov (%p30_p3, %s29_s18), 0  ;;  %s818_s5 = scalar_lea.hbm %s901_s0, %s421_s27 }
  0x34   : > { %s36_s6 = ssub.s32 %s673_s16, %s932_s18  ;;  %s197_s8 = sshll.u32 %s188_s7, 4  ;;  %s198_s8 = int_to_ptr.vmem [resolvable:$true] %s197_s8 }
  0x35   : > { %p39_p7 = scmp.eq.s32.totalorder %s36_s6, 0  ;;  %s185_s9 = scalar_lea.sflag [#allocation3], %s184_s19 }
  0x36   : > { %p919_p8 = scmp.ne.s32.totalorder %s917_s29, 0  ;;  %s578_s10 = scalar_lea.vmem %s198_s8, 512 }
  0x37   : > { %s825_s4 = scalar_select %p39_p7, %s665_s14, %s41_s20  }
  0x38   : > { %p567_p9 = pneg %p919_p8  ;;  %p579_p12 = scmp.ne.s32.totalorder %s198_s8, %s578_s10 }
  0x39   : > { %s681_s11 = smov [#allocation2]  }
  0x3a   : > { %p581_p13 = pnand %p579_p12, %p567_p9  ;;  %s583_s28 = sshll.u32 %s681_s11, 4  ;;  %s584_s28 = int_to_ptr.vmem [resolvable:$false] %s583_s28 }
  0x3b   : > { %s585_s27 = scalar_lea.vmem %s584_s28, 1024  ;;  %p586_p2 = scmp.lt.s32.totalorder %s198_s8, %s584_s28 }
  0x3c   : > { %p582_p4 = pneg %p581_p13  ;;  %p587_p6 = scmp.lt.s32.totalorder %s585_s27, %s578_s10 }
  0x3e   : > { %p588_p11 = por %p587_p6, %p586_p2 }
  0x40   : > { %p589_p1 = pnand %p588_p11, %p582_p4 }
  0x42   : > { %592 = shalt.err (!%p589_p1)
}
  0x43   : > { %s682_s22 = smov 256   ;;  %s683_s20 = smov 128  }
  0x44   : > { %s684_s19 = smov 8   ;;  %p920_p0 = scmp.ne.s32.totalorder %s916_s26, 0 }
  0x45   : > { %445 = dma.hbm_to_vmem [thread:$0]  (!%p919_p8), %s818_s5, 512, %s198_s8, %s185_s9, %s682_s22, %s683_s20, %s684_s19  }
  0x46   : > { %209 = sbr.rel (%p920_p0) target bundleno = 218 (0xda), region = 32  ;;  %s835_s30 = sand.u32 (!%p920_p0), 1, %s661_s13  }
  0x47   : > { %s412_s6 = sshll.u32 (!%p920_p0), %s835_s30, 5  ;;  %s212_s7 = scalar_lea.sflag (!%p920_p0), [#allocation3], %s835_s30 }
  0x48   : > { %s215_s10 = scalar_lea.vmem (!%p920_p0), [#allocation2], %s412_s6  ;;  %p921_p10 = scmp.ne.s32.totalorder (!%p920_p0), %s913_s23, 0 }
  0x4b   : > { %644 = dma.done.wait (%p921_p10), %s212_s7, 512  }
  0x4c   : > { %646 = vsyncadd (%p921_p10), %s212_s7, 4294966784  ;;  %p922_p5 = scmp.ne.s32.totalorder %s911_s21, 0 }
  0x4e   : > { %648 = dma.done.wait (%p922_p5), [#allocation6], 256  }
  0x4f   : > { %650 = vsyncadd (%p922_p5), [#allocation6], 4294967040  ;;  %v248_v0 = vld [vmem:[%s215_s10 + $0x10] sm:$0xff]  ;;  %v246_v1 = vld [vmem:[%s215_s10] sm:$0xff]  ;;  %s685_s26 = smov 64   ;;  %s245_s21 = scalar_lea.vmem [#allocation8], %s412_s6 }
  0x50   : > { %256 = vrot.lane.b32.xlu1 %v248_v0, %s685_s26  ;;  %252 = vrot.lane.b32.xlu0 %v246_v1, %s685_s26  ;;  %v249_v2 = vld [vmem:[%s215_s10 + $0x18] sm:$0xff]  ;;  %v247_v3 = vld [vmem:[%s215_s10 + $0x8] sm:$0xff]  ;;  %v250_v5 = vld [vmem:[#allocation5] sm:$0xff]  ;;  %s292_s23 = sshll.u32 %s245_s21, 4  ;;  %s422_s29 = sshll.u32 %s669_s15, 10  ;;  %s848_s23 = int_to_ptr.vmem [resolvable:$true] %s292_s23 }
  0x51   : > { %v251_v4 = vld [vmem:[#allocation7] sm:$0xff]  ;;  %s853_s9 = scalar_lea.hbm %s904_s3, %s422_s29  ;;  %s277_s15 = scalar_lea.sflag [#allocation4], %s835_s30 }
  0x52   : > { %v262_v6 = vmul.f32 %v251_v4, %v248_v0  ;;  %v260_v7 = vmul.f32 %v251_v4, %v246_v1  ;;  %v263_v12 = vmul.f32 %v251_v4, %v249_v2  ;;  %v261_v13 = vmul.f32 %v251_v4, %v247_v3  ;;  %s593_s11 = scalar_lea.vmem %s848_s23, 512  ;;  %p923_p7 = scmp.ne.s32.totalorder %s914_s24, 0 }
  0x53   : > { %p594_p3 = scmp.ne.s32.totalorder %s848_s23, %s593_s11  ;;  %s686_s28 = smov [#allocation8]  }
  0x54   : > { %258 = vrot.lane.b32.xlu1 %v249_v2, %s685_s26  ;;  %254 = vrot.lane.b32.xlu0 %v247_v3, %s685_s26  ;;  %s597_s27 = sshll.u32 %s686_s28, 4  ;;  %s598_s27 = int_to_ptr.vmem [resolvable:$false] %s597_s27 }
  0x55   : > { %p595_p8 = pnand %p594_p3, %p923_p7  ;;  %s599_s22 = scalar_lea.vmem %s598_s27, 1024 }
  0x56   : > { %p600_p12 = scmp.lt.s32.totalorder %s848_s23, %s598_s27  ;;  %p601_p13 = scmp.lt.s32.totalorder %s599_s22, %s593_s11 }
  0x57   : > { %p596_p9 = pneg %p595_p8 }
  0x58   : > { %p602_p4 = por %p601_p13, %p600_p12 }
  0x5a   : > { %p603_p2 = pnand %p602_p4, %p596_p9 }
  0xc2   : > { %v257_v8 = vpop.permute.xlu1 %256  ;;  %v253_v9 = vpop.permute.xlu0 %252 }
  0xc3   : > { %v266_v10 = vmul.f32 %v257_v8, %v250_v5  ;;  %v264_v11 = vmul.f32 %v253_v9, %v250_v5 }
  0xc5   : > { %v270_v14 = vadd.f32 %v266_v10, %v262_v6  ;;  %v268_v15 = vadd.f32 %v264_v11, %v260_v7 }
  0xc6   : > { %v259_v16 = vpop.permute.xlu1 %258  ;;  %v255_v17 = vpop.permute.xlu0 %254 }
  0xc7   : > { %274 = vst [vmem:[%s245_s21 + $0x10] sm:$0xff] %v270_v14  ;;  %272 = vst [vmem:[%s245_s21] sm:$0xff] %v268_v15  ;;  %v267_v18 = vmul.f32 %v259_v16, %v250_v5  ;;  %v265_v19 = vmul.f32 %v255_v17, %v250_v5 }
  0xc9   : > { %v271_v20 = vadd.f32 %v267_v18, %v263_v12  ;;  %v269_v21 = vadd.f32 %v265_v19, %v261_v13 }
  0xcb   : > { %275 = vst [vmem:[%s245_s21 + $0x18] sm:$0xff] %v271_v20  ;;  %273 = vst [vmem:[%s245_s21 + $0x8] sm:$0xff] %v269_v21 }
  0xcc   : > { %606 = shalt.err (!%p603_p2)
}
  0xcd   : > { %s607_s20 = scalar_lea.hbm %s853_s9, 512  ;;  %s611_s7 = scalar_lea.hbm %s904_s3, 2048 }
  0xce   : > { %p608_p6 = scmp.ne.s32.totalorder %s853_s9, %s607_s20  ;;  %p612_p0 = scmp.lt.s32.totalorder %s853_s9, %s904_s3 }
  0xcf   : > { %p613_p10 = scmp.lt.s32.totalorder %s611_s7, %s607_s20 }
  0xd0   : > { %p609_p11 = pnand %p608_p6, %p923_p7 }
  0xd1   : > { %p614_p5 = por %p613_p10, %p612_p0 }
  0xd2   : > { %p610_p1 = pneg %p609_p11 }
  0xd4   : > { %p615_p3 = pnand %p614_p5, %p610_p1 }
  0xd6   : > { %618 = shalt.err (!%p615_p3)
}
  0xd7   : > { %s687_s21 = smov 128   ;;  %s688_s29 = smov 256  }
  0xd8   : > { %s689_s5 = smov 8  }
  0xd9   : > { %433 = dma.vmem_to_hbm [thread:$0]  (%p923_p7), %s848_s23, 512, %s853_s9, %s277_s15, %s687_s21, %s688_s29, %s689_s5  }
  0xda PF: > { %s307_s8 = sand.u32 1, %s657_s12   ;;  %p924_p8 = scmp.ne.s32.totalorder %s915_s25, 0 }
  0xdb   : > { %p925_p9 = scmp.ge.s32.totalorder %s677_s17, 2  ;;  %s308_s11 = scalar_lea.sflag [#allocation4], %s307_s8 }
  0xdd   : > { %p447_p12 = pnand %p925_p9, %p924_p8 }
  0xdf   : > { %p448_p13 = pneg %p447_p12 }
  0xe1   : > { %652 = dma.done.wait (%p448_p13), %s308_s11, 512  }
  0xe2   : > { %654 = vsyncadd (%p448_p13), %s308_s11, 4294966784  ;;  %s20_s17 = sadd.s32 1, %s677_s17   ;;  %s926_s12 = smov %s661_s13 }
  0xe3   : > { %p17_p4 = scmp.ge.s32.totalorder %s20_s17, 4   ;;  %s927_s13 = smov %s665_s14 }
  0xe4   : > { %s928_s14 = smov %s825_s4  ;;  %s929_s15 = smov %s673_s16 }
  0xe5   : > { %s930_s16 = smov %s932_s18  ;;  %19 = sbr.rel (!%p17_p4) target bundleno = 7 (0x7), region = 87 }
  0xea   :  { %313 = vsyncpa [#allocation3], 1 }
  0xeb   :  { %315 = vsyncpa [#allocation3 + $0x1], 1 }
  0xec   :  { %316 = vsyncpa [#allocation6], 1 }
  0xed   :  { %317 = vsyncpa [#allocation4], 1 }
  0xee   :  { %319 = vsyncpa [#allocation4 + $0x1], 1 }

</bundles_post_ra>
